<compile_context>
chip_gen: v7x
topology: tpu7x:2x2x1
jax: 0.10.0
libtpu: 0.0.40
codegen_flags: <defaults>
</compile_context>

<pallas_src>
import functools
import math

import jax
import jax.numpy as jnp
from jax.experimental import pallas as pl
from jax.experimental.pallas import tpu as pltpu


def _round_up(x, m):
    return ((x + m - 1) // m) * m


def _linear_kernel(x_ref, w_ref, *rest, has_bias, acc_in_out, nk):
    """One (tm, tn) output tile; K is the last grid axis (nk steps).

    x_ref: (tm, tk)   w_ref: (tk, tn)   [b_ref: (1, tn)]   o_ref: (tm, tn)
    [acc_ref: (tm, tn) f32 scratch -- only when output dtype != f32 and nk>1]
    """
    if has_bias:
        b_ref = rest[0]
        rest = rest[1:]
    else:
        b_ref = None
    o_ref = rest[0]

    part = jnp.dot(x_ref[...], w_ref[...], preferred_element_type=jnp.float32)

    if nk == 1:
        # Single reduction step: write the tile directly, no RMW / branches.
        if has_bias:
            part = part + b_ref[...].astype(jnp.float32)
        o_ref[...] = part.astype(o_ref.dtype)
        return

    acc_ref = o_ref if acc_in_out else rest[1]
    k = pl.program_id(2)

    @pl.when(k == 0)
    def _init():
        if acc_in_out and has_bias:
            # Fold the bias into the accumulator init (o_ref is the acc).
            acc_ref[...] = jnp.broadcast_to(
                b_ref[...].astype(jnp.float32), acc_ref.shape)
        else:
            acc_ref[...] = jnp.zeros_like(acc_ref)

    acc_ref[...] += part

    if not acc_in_out:
        @pl.when(k == nk - 1)
        def _finalize():
            res = acc_ref[...]
            if has_bias:
                res = res + b_ref[...].astype(jnp.float32)
            o_ref[...] = res.astype(o_ref.dtype)


def linear_pallas(x, weight, bias=None, *, compute_dtype=jnp.bfloat16,
                  tm_max=1024, tn_max=1024, tk_max=1024):
    """y = x @ weight.T + bias  (torch.nn.Linear semantics).

    x:      [..., in_dim]
    weight: [out_dim, in_dim]   (NOT pre-transposed by the caller)
    bias:   [out_dim] or None
    compute_dtype: dtype fed to the MXU (accumulation is always f32).
                   Default bf16; pass jnp.float32 for the exact f32 matmul.
    """
    in_dim = x.shape[-1]
    out_dim = weight.shape[0]
    lead_shape = x.shape[:-1]
    out_dtype = x.dtype
    has_bias = bias is not None

    x2d = x.reshape(-1, in_dim)
    m = x2d.shape[0]
    if m == 0:
        return jnp.zeros((*lead_shape, out_dim), out_dtype)

    # Weight transposed once to (K, N); fused with the optional bf16 cast.
    w_t = weight.T
    if compute_dtype is not None:
        x2d = x2d.astype(compute_dtype)
        w_t = w_t.astype(compute_dtype)

    csize = jnp.dtype(x2d.dtype).itemsize
    osize = jnp.dtype(out_dtype).itemsize
    sub = {4: 8, 2: 16, 1: 32}.get(csize, 8)  # sublane multiple per dtype

    # ---- tile sizes ------------------------------------------------------
    # M / N: full dim when it fits under the cap (always a legal block),
    # otherwise an aligned cap with Pallas-handled edge over-cover.
    tm = m if m <= tm_max else (tm_max // sub) * sub
    tn = out_dim if out_dim <= tn_max else (tn_max // 128) * 128

    # K must be covered exactly (garbage reads would corrupt the reduction).
    if in_dim <= tk_max:
        tk, kp = in_dim, in_dim           # single K step, no padding at all
    else:
        kp = _round_up(in_dim, 128)
        tk = 128
        for cand in range((tk_max // 128) * 128, 127, -128):
            if kp % cand == 0:
                tk = cand
                break
        if kp != in_dim:                  # pad K only (<= 127 columns)
            x2d = jnp.pad(x2d, ((0, 0), (0, kp - in_dim)))
            w_t = jnp.pad(w_t, ((0, kp - in_dim), (0, 0)))

    m_blocks = pl.cdiv(m, tm)
    n_blocks = pl.cdiv(out_dim, tn)
    k_blocks = kp // tk

    acc_in_out = jnp.dtype(out_dtype) == jnp.dtype(jnp.float32)

    # ---- grid: lead with the axis whose operand dominates HBM traffic so a
    # megacore split (v7x: 2 TensorCores) halves the big operand's stream.
    if out_dim >= m:                      # weight bytes >= activation bytes
        grid = (n_blocks, m_blocks, k_blocks)
        x_map = lambda j, i, k: (i, k)
        w_map = lambda j, i, k: (k, j)
        b_map = lambda j, i, k: (0, j)
        o_map = lambda j, i, k: (i, j)
    else:
        grid = (m_blocks, n_blocks, k_blocks)
        x_map = lambda i, j, k: (i, k)
        w_map = lambda i, j, k: (k, j)
        b_map = lambda i, j, k: (0, j)
        o_map = lambda i, j, k: (i, j)

    in_specs = [pl.BlockSpec((tm, tk), x_map),
                pl.BlockSpec((tk, tn), w_map)]
    args = [x2d, w_t]
    if has_bias:
        in_specs.append(pl.BlockSpec((1, tn), b_map))
        args.append(bias.reshape(1, out_dim))

    need_scratch = (not acc_in_out) and (k_blocks > 1)
    scratch_shapes = ([pltpu.VMEM((tm, tn), jnp.float32)]
                      if need_scratch else [])

    # ---- VMEM budget (double-buffered tiles + optional f32 scratch).
    tile_bytes = 2 * (tm * tk + tk * tn) * csize + 2 * tm * tn * osize
    if has_bias:
        tile_bytes += 2 * tn * jnp.dtype(bias.dtype).itemsize
    if need_scratch:
        tile_bytes += tm * tn * 4
    vmem_limit = min(max(int(tile_bytes * 1.4), 32 * 1024 * 1024),
                     64 * 1024 * 1024)

    cost = pl.CostEstimate(
        flops=2 * m * out_dim * in_dim,
        transcendentals=0,
        bytes_accessed=(x2d.size * csize + w_t.size * csize
                        + (bias.size * jnp.dtype(bias.dtype).itemsize
                           if has_bias else 0)
                        + m * out_dim * osize),
    )

    kernel = functools.partial(_linear_kernel, has_bias=has_bias,
                               acc_in_out=acc_in_out, nk=k_blocks)

    out = pl.pallas_call(
        kernel,
        out_shape=jax.ShapeDtypeStruct((m, out_dim), out_dtype),
        grid_spec=pltpu.PrefetchScalarGridSpec(
            num_scalar_prefetch=0,
            grid=grid,
            in_specs=in_specs,
            out_specs=pl.BlockSpec((tm, tn), o_map),
            scratch_shapes=scratch_shapes,
        ),
        compiler_params=pltpu.CompilerParams(
            dimension_semantics=("parallel", "parallel", "arbitrary"),
            vmem_limit_bytes=vmem_limit,
        ),
        cost_estimate=cost,
    )(*args)

    return out.reshape(*lead_shape, out_dim)


def init_linear_params(key, in_dim, out_dim, w_init="linear"):
    """Deterministic init matching the PyTorch module's __init__."""
    kw, kb = jax.random.split(key)
    # xavier_uniform_ with gain = calculate_gain('linear') = 1.0
    gain = 1.0
    bound_w = gain * math.sqrt(6.0 / (in_dim + out_dim))
    weight = jax.random.uniform(
        kw, (out_dim, in_dim), dtype=jnp.float32,
        minval=-bound_w, maxval=bound_w)
    # nn.Linear default bias init: U(-1/sqrt(fan_in), 1/sqrt(fan_in))
    bound_b = 1.0 / math.sqrt(in_dim)
    bias = jax.random.uniform(
        kb, (out_dim,), dtype=jnp.float32,
        minval=-bound_b, maxval=bound_b)
    return weight, bias


if __name__ == "__main__":
    key = jax.random.PRNGKey(0)
    k_x, k_p = jax.random.split(key)

    batch, seq, in_dim, out_dim = 2, 8, 32, 64
    x = jax.random.normal(k_x, (batch, seq, in_dim), dtype=jnp.float32)
    weight, bias = init_linear_params(k_p, in_dim, out_dim)

    y_ref = x @ weight.T + bias

    # Default fast path: bf16 MXU operands, f32 accumulation.
    y_bf16 = jax.block_until_ready(jax.jit(linear_pallas)(x, weight, bias))
    assert y_bf16.shape == (batch, seq, out_dim)
    assert jnp.allclose(y_bf16, y_ref, atol=5e-2, rtol=5e-2), (
        float(jnp.max(jnp.abs(y_bf16 - y_ref))))

    # Exact f32 path.
    lin_f32 = jax.jit(functools.partial(linear_pallas,
                                        compute_dtype=jnp.float32))
    y_f32 = jax.block_until_ready(lin_f32(x, weight, bias))
    assert jnp.allclose(y_f32, y_ref, atol=1e-5, rtol=1e-5), (
        float(jnp.max(jnp.abs(y_f32 - y_ref))))

    # bias=False variant of the module.
    y_nb = jax.block_until_ready(lin_f32(x, weight, None))
    assert jnp.allclose(y_nb, x @ weight.T, atol=1e-5, rtol=1e-5), (
        float(jnp.max(jnp.abs(y_nb - x @ weight.T))))

    print("KERNEL_OK")
</pallas_src>

<mosaic_0001>
module attributes {stable_mosaic.version = 11 : i64} {
  func.func @_linear_kernel(%arg0: i32, %arg1: i32, %arg2: i32, %arg3: memref<16x32xbf16, #tpu.memory_space<vmem>>, %arg4: memref<32x64xbf16, #tpu.memory_space<vmem>>, %arg5: memref<1x64xf32, #tpu.memory_space<vmem>>, %arg6: memref<16x64xf32, #tpu.memory_space<vmem>>) attributes {dimension_semantics = [#tpu.dimension_semantics<parallel>, #tpu.dimension_semantics<parallel>, #tpu.dimension_semantics<arbitrary>], iteration_bounds = array<i64: 1, 1, 1>, scalar_prefetch = 0 : i64, scratch_operands = 0 : i64, tpu.core_type = #tpu.core_type<tc>, window_params = [{transform_indices = @transform_0, window_bounds = array<i64: 16, 32>}, {transform_indices = @transform_1, window_bounds = array<i64: 32, 64>}, {transform_indices = @transform_2, window_bounds = array<i64: 1, 64>}, {transform_indices = @transform_3, window_bounds = array<i64: 16, 64>}]} {
    %c0 = arith.constant 0 : index
    %c0_0 = arith.constant 0 : index
    %0 = vector.load %arg3[%c0, %c0_0] : memref<16x32xbf16, #tpu.memory_space<vmem>>, vector<16x32xbf16>
    %c0_1 = arith.constant 0 : index
    %c0_2 = arith.constant 0 : index
    %1 = vector.load %arg4[%c0_1, %c0_2] : memref<32x64xbf16, #tpu.memory_space<vmem>>, vector<32x64xbf16>
    %cst = arith.constant dense<0.000000e+00> : vector<16x64xf32>
    %2 = tpu.matmul %0, %1, %cst {dimension_numbers = #tpu.dot_dimension_numbers<[1], [0], [0], [1], [0, 0, 1, 1], [], []>} : vector<16x32xbf16>, vector<32x64xbf16>, vector<16x64xf32> -> vector<16x64xf32>
    %c0_3 = arith.constant 0 : index
    %c0_4 = arith.constant 0 : index
    %3 = vector.load %arg5[%c0_3, %c0_4] : memref<1x64xf32, #tpu.memory_space<vmem>>, vector<1x64xf32>
    %4 = vector.broadcast %3 : vector<1x64xf32> to vector<16x64xf32>
    %5 = arith.addf %2, %4 : vector<16x64xf32>
    %c0_5 = arith.constant 0 : index
    %c0_6 = arith.constant 0 : index
    %6 = vector.load %arg6[%c0_5, %c0_6] : memref<16x64xf32, #tpu.memory_space<vmem>>, vector<16x64xf32>
    tpu.vector_store %arg6[%c0_5, %c0_6], %5 {strides = array<i32>} : memref<16x64xf32, #tpu.memory_space<vmem>>, vector<16x64xf32>,
    return
  }
  func.func @transform_0(%arg0: i32, %arg1: i32, %arg2: i32) -> (i32, i32) {
    %c0_i32 = arith.constant 0 : i32
    return %arg1, %arg2 : i32, i32
  }
  func.func @transform_1(%arg0: i32, %arg1: i32, %arg2: i32) -> (i32, i32) {
    %c0_i32 = arith.constant 0 : i32
    return %arg2, %arg0 : i32, i32
  }
  func.func @transform_2(%arg0: i32, %arg1: i32, %arg2: i32) -> (i32, i32) {
    %c0_i32 = arith.constant 0 : i32
    %c0_i32_0 = arith.constant 0 : i32
    return %c0_i32, %arg0 : i32, i32
  }
  func.func @transform_3(%arg0: i32, %arg1: i32, %arg2: i32) -> (i32, i32) {
    %c0_i32 = arith.constant 0 : i32
    return %arg1, %arg0 : i32, i32
  }
}

</mosaic_0001>

<bundles_post_ra>
// kernel: linear_pallas.1
= control target key start
LH: loop header
LB: loop body
LE: loop exit
PB: predicated region body
PF: predicated region fallthrough
CT: control target
= control target key end

     0   :  { %v158_v1 = vmov 0.0   ;;  %vm159_vm0 = vmmov 0   ;;  %s207_s0 = inlined_call_operand.vmem [shape: bf16[16,32], index: 0, kind: input, shape index: {}]   ;;  %s208_s1 = inlined_call_operand.vmem [shape: bf16[32,64], index: 1, kind: input, shape index: {}]   ;;  %s209_s2 = inlined_call_operand.vmem [shape: f32[1,64], index: 2, kind: input, shape index: {}]   ;;  %s210_s3 = inlined_call_operand.hbm [shape: f32[16,64], index: 3, kind: output, shape index: {}]  }
   0x1   :  { %v131_v0 = vld [vmem:[%s208_s1] sm:$0xff]   ;;  %118 = vmatprep.subr.bf16.mxu0 %v158_v1  ;;  %v132_v2 = vld [vmem:[%s208_s1 + $0x8] sm:$0xff]   ;;  %122 = vmatprep.mubr.msk.bf16.mxu0 %vm159_vm0, %v158_v1 }
   0x2   :  { %119 = vmatpush3.bf16.msra.mxu0 %v131_v0 }
   0x3   :  { %120 = vmatprep.subr.bf16.mxu0 %v158_v1 }
   0x4   :  { %8 = vsyncpa [#allocation3], 0  ;;  %v133_v3 = vld [vmem:[%s207_s0] sm:$0xff]   ;;  %vm46_vm1 = vcmask 261120   ;;  %s160_s20 = smov [#allocation2]   ;;  %vm91_vm2 = vcmask 523264  }
   0x5   :  { %v110_v4 = vld [vmem:[%s209_s2] ss:$0 sm:$0xff]  ;;  %s99_s21 = sshll.u32 %s160_s20, 4  ;;  %s100_s21 = int_to_ptr.vmem [resolvable:$true] %s99_s21 }
   0x6   :  { %121 = vmatpush3.bf16.msra.mxu0 %v132_v2  ;;  %s134_s0 = scalar_lea.vmem %s100_s21, 256  ;;  %p139_p1 = scmp.lt.s32.totalorder %s100_s21, %s100_s21 }
   0x7   :  { %p135_p0 = scmp.ne.s32.totalorder %s100_s21, %s134_s0  ;;  %p140_p2 = scmp.lt.s32.totalorder %s134_s0, %s134_s0 }
   0x9   :  { %123 = vmatmul.mubr.msk.bf16.vlgmr.msra.gmra.mrb[0].mxu0 %vm46_vm1, %v133_v3  ;;  %p141_p3 = por %p140_p2, %p139_p1 }
   0xb   :  { %p142_p4 = pnand %p141_p3, %p135_p0 }
  0xdc   :  { %v84_v5 = vpop.f32.mrb[0].mxu0 }
  0xdd   :  { %v85_v6 = vadd.f32 %v110_v4, %v84_v5  ;;  %v124_v7 = vpop.f32.mrb[1].mxu0 }
  0xde   :  { %v87_v8 = vpop.f32.mrb[2].mxu0 }
  0xdf   :  { %92 = vst.msk [vmem:[#allocation2] sm:$0xff] %vm91_vm2, %v85_v6  ;;  %v88_v9 = vadd.f32 %v110_v4, %v87_v8  ;;  %v125_v10 = vpop.f32.mrb[3].mxu0 }
  0xe1   :  { %93 = vst.msk [vmem:[#allocation2 + $0x8] sm:$0xff] %vm91_vm2, %v88_v9 }
  0xe2   :  { %145 = shalt.err (!%p142_p4)
}
  0xe3   :  { %s146_s22 = scalar_lea.hbm %s210_s3, 256 }
  0xe4   :  { %p147_p5 = scmp.ne.s32.totalorder %s210_s3, %s146_s22  ;;  %p150_p6 = scmp.lt.u32.totalorder %s146_s22, %s210_s3 }
  0xe6   :  { %p152_p7 = pnand %p150_p6, %p147_p5 }
  0xe8   :  { %155 = shalt.err (!%p152_p7)
}
  0xe9   :  { %s161_s27 = smov 128   ;;  %s162_s28 = smov 8  }
  0xea   :  { %105 = dma.vmem_to_hbm [thread:$0]  %s100_s21, 256, %s210_s3, [#allocation3], %s161_s27, %s161_s27, %s162_s28  }
  0xeb   :  { %156 = dma.done.wait [#allocation3], 256  }
  0xec   :  { %157 = vsyncadd [#allocation3], 4294967040 }
  0xed   :  { %109 = vsyncpa [#allocation3], 1 }

</bundles_post_ra>
